<compile_context>
chip_gen: v6e
topology: v6e:2x2x1
jax: 0.10.0
libtpu: 0.0.40
codegen_flags: <defaults>
</compile_context>

<pallas_src>
import jax
import jax.numpy as jnp
from jax.experimental import pallas as pl
from jax.experimental.pallas import tpu as pltpu


def _round_up(x: int, m: int) -> int:
    return ((x + m - 1) // m) * m


# ----------------------------------------------------------------------------
# Pallas kernel: the whole Critic hot path fused into one kernel.
#   obs@W0o + act@W0a + b0 -> ReLU -> @W1 + b1 -> ReLU -> VPU dot w2 + b2
# ----------------------------------------------------------------------------
def critic_kernel(obs_ref, act_ref,
                  w0o_ref, w0a_ref, b0_ref,   # preprocess layer (split first dot)
                  w1_ref, b1_ref,             # last-MLP hidden layer
                  w2_ref, b2_ref,             # last-MLP final layer ([1, H1p] row)
                  out_ref):
    # --- layer 0: split dot avoids concatenating along the lane axis ---------
    obs = obs_ref[...].astype(w0o_ref.dtype)
    act = act_ref[...].astype(w0a_ref.dtype)
    h0 = jnp.dot(obs, w0o_ref[...], preferred_element_type=jnp.float32)
    h0 = h0 + jnp.dot(act, w0a_ref[...], preferred_element_type=jnp.float32)
    h0 = jnp.maximum(h0 + b0_ref[...], 0.0)                      # f32 [TB, H0p]

    # --- layer 1: hidden layer of Critic.last --------------------------------
    h1 = jnp.dot(h0.astype(w1_ref.dtype), w1_ref[...],
                 preferred_element_type=jnp.float32)
    h1 = jnp.maximum(h1 + b1_ref[...], 0.0)                      # f32 [TB, H1p]

    # --- layer 2: out_dim == 1 -> VPU multiply + XLU lane reduction ----------
    # (an N=1 MXU matmul would use <1% of the MXU and still pay MRF latency)
    q = jnp.sum(h1 * w2_ref[...], axis=-1, keepdims=True)        # [TB, 1]
    out_ref[...] = q + b2_ref[...]


# ----------------------------------------------------------------------------
# Host-side parameter packing: split first-layer weight, zero-pad hidden dims
# to lane width (128), cast matmul weights to the compute dtype (biases f32).
# Done once per parameter set; zero padding does not change the math.
# ----------------------------------------------------------------------------
def prepare_params(params, obs_dim, act_dim, compute_dtype=jnp.bfloat16, lane=128):
    w0, b0, w1, b1, w2, b2 = params
    in_dim, H0 = w0.shape
    H1 = w1.shape[1]
    assert in_dim == obs_dim + act_dim
    H0p = _round_up(H0, lane)
    H1p = _round_up(H1, lane)

    def pad_to(a, shape):
        return jnp.pad(a, [(0, s - d) for d, s in zip(a.shape, shape)])

    w0o = pad_to(w0[:obs_dim, :], (obs_dim, H0p)).astype(compute_dtype)
    w0a = pad_to(w0[obs_dim:, :], (act_dim, H0p)).astype(compute_dtype)
    b0p = pad_to(b0.reshape(1, H0), (1, H0p)).astype(jnp.float32)
    w1p = pad_to(w1, (H0p, H1p)).astype(compute_dtype)
    b1p = pad_to(b1.reshape(1, H1), (1, H1p)).astype(jnp.float32)
    w2r = pad_to(w2.reshape(1, H1), (1, H1p)).astype(jnp.float32)   # row vector
    b2p = b2.reshape(1, 1).astype(jnp.float32)
    return (w0o, w0a, b0p, w1p, b1p, w2r, b2p)


# ----------------------------------------------------------------------------
# Wrapper: batch-gridded pallas_call; weights are full resident blocks.
# ----------------------------------------------------------------------------
def critic_forward(obs, act, packed_params, *, block_b=128):
    B, obs_dim = obs.shape
    act_dim = act.shape[1]
    w0o, w0a, b0, w1, b1, w2, b2 = packed_params
    H0p = w0o.shape[1]
    H1p = w1.shape[1]

    # Batch tile: full batch if small, else 128-row tiles (pipelined, and
    # shardable across v7x's two TensorCores via the "parallel" axis).
    tb = B if B <= block_b else block_b
    grid = (pl.cdiv(B, tb),)

    row_spec = lambda d: pl.BlockSpec((tb, d), lambda i: (i, 0))
    full_spec = lambda a: pl.BlockSpec(a.shape, lambda i: (0, 0))   # resident

    flops = 2 * B * (obs_dim * H0p + act_dim * H0p + H0p * H1p + H1p)
    bytes_accessed = int(
        obs.size * obs.dtype.itemsize + act.size * act.dtype.itemsize
        + sum(p.size * p.dtype.itemsize for p in packed_params)
        + B * 4)

    return pl.pallas_call(
        critic_kernel,
        out_shape=jax.ShapeDtypeStruct((B, 1), jnp.float32),
        grid=grid,
        in_specs=[row_spec(obs_dim), row_spec(act_dim),
                  full_spec(w0o), full_spec(w0a), full_spec(b0),
                  full_spec(w1), full_spec(b1),
                  full_spec(w2), full_spec(b2)],
        out_specs=pl.BlockSpec((tb, 1), lambda i: (i, 0)),
        compiler_params=pltpu.CompilerParams(
            dimension_semantics=("parallel",)),
        cost_estimate=pl.CostEstimate(flops=flops, transcendentals=0,
                                      bytes_accessed=bytes_accessed),
    )(obs, act, *packed_params)


# ----------------------------------------------------------------------------
# Deterministic parameter init (PyTorch nn.Linear-style uniform(-1/sqrt(fan_in)))
# and a pure-JAX reference for correctness.
# ----------------------------------------------------------------------------
def init_linear(key, in_dim, out_dim):
    kw, kb = jax.random.split(key)
    bound = 1.0 / jnp.sqrt(jnp.float32(in_dim))
    w = jax.random.uniform(kw, (in_dim, out_dim), jnp.float32, -bound, bound)
    b = jax.random.uniform(kb, (1, out_dim), jnp.float32, -bound, bound)
    return w, b


def reference_forward(obs, act, params):
    w0, b0, w1, b1, w2, b2 = params
    x = jnp.concatenate([obs, act], axis=-1)
    h0 = jnp.maximum(x @ w0 + b0, 0.0)
    h1 = jnp.maximum(h0 @ w1 + b1, 0.0)
    return h1 @ w2 + b2


if __name__ == "__main__":
    # Small shapes consistent with the module's forward: flat obs/act vectors.
    B, OBS_DIM, ACT_DIM = 8, 16, 8
    H0, H1 = 32, 32   # preprocess_net output_dim = 32, Critic hidden_sizes = (32,)

    key = jax.random.PRNGKey(0)
    k_obs, k_act, k0, k1, k2, k_big = jax.random.split(key, 6)

    obs = jax.random.normal(k_obs, (B, OBS_DIM), jnp.float32)
    act = jax.random.normal(k_act, (B, ACT_DIM), jnp.float32)

    w0, b0 = init_linear(k0, OBS_DIM + ACT_DIM, H0)
    w1, b1 = init_linear(k1, H0, H1)
    w2, b2 = init_linear(k2, H1, 1)
    params = (w0, b0, w1, b1, w2, b2)
    q_ref = reference_forward(obs, act, params)

    # --- float32 path: exact check vs reference ------------------------------
    packed_f32 = prepare_params(params, OBS_DIM, ACT_DIM,
                                compute_dtype=jnp.float32)
    q32 = jax.block_until_ready(critic_forward(obs, act, packed_f32))
    assert q32.shape == (B, 1)
    assert jnp.allclose(q32, q_ref, atol=1e-5, rtol=1e-5), "f32 mismatch vs ref"

    # --- bfloat16 matmul path (f32 accumulation): fast path for v6e/v7x ------
    packed_bf16 = prepare_params(params, OBS_DIM, ACT_DIM,
                                 compute_dtype=jnp.bfloat16)
    qbf = jax.block_until_ready(critic_forward(obs, act, packed_bf16))
    assert jnp.allclose(qbf, q_ref, atol=5e-2, rtol=5e-2), "bf16 mismatch vs ref"

    # --- larger, non-divisible batch to exercise the batch grid --------------
    Bb = 300
    kb1, kb2 = jax.random.split(k_big)
    obs_b = jax.random.normal(kb1, (Bb, OBS_DIM), jnp.float32)
    act_b = jax.random.normal(kb2, (Bb, ACT_DIM), jnp.float32)
    qb = jax.block_until_ready(critic_forward(obs_b, act_b, packed_bf16))
    qb_ref = reference_forward(obs_b, act_b, params)
    assert qb.shape == (Bb, 1)
    assert jnp.allclose(qb, qb_ref, atol=5e-2, rtol=5e-2), "grid mismatch vs ref"

    print("KERNEL_OK")
</pallas_src>

<mosaic_0001>
module attributes {stable_mosaic.version = 11 : i64} {
  func.func @critic_kernel(%arg0: i32, %arg1: memref<8x16xf32, #tpu.memory_space<vmem>>, %arg2: memref<8x8xf32, #tpu.memory_space<vmem>>, %arg3: memref<16x128xf32, #tpu.memory_space<vmem>>, %arg4: memref<8x128xf32, #tpu.memory_space<vmem>>, %arg5: memref<1x128xf32, #tpu.memory_space<vmem>>, %arg6: memref<128x128xf32, #tpu.memory_space<vmem>>, %arg7: memref<1x128xf32, #tpu.memory_space<vmem>>, %arg8: memref<1x128xf32, #tpu.memory_space<vmem>>, %arg9: memref<1x1xf32, #tpu.memory_space<vmem>>, %arg10: memref<8x1xf32, #tpu.memory_space<vmem>>) attributes {dimension_semantics = [#tpu.dimension_semantics<parallel>], iteration_bounds = array<i64: 1>, scalar_prefetch = 0 : i64, scratch_operands = 0 : i64, tpu.core_type = #tpu.core_type<tc>, window_params = [{transform_indices = @transform_0, window_bounds = array<i64: 8, 16>}, {transform_indices = @transform_1, window_bounds = array<i64: 8, 8>}, {pipeline_mode = #tpu.pipeline_mode<synchronous>, transform_indices = @transform_2, window_bounds = array<i64: 16, 128>}, {pipeline_mode = #tpu.pipeline_mode<synchronous>, transform_indices = @transform_3, window_bounds = array<i64: 8, 128>}, {pipeline_mode = #tpu.pipeline_mode<synchronous>, transform_indices = @transform_4, window_bounds = array<i64: 1, 128>}, {pipeline_mode = #tpu.pipeline_mode<synchronous>, transform_indices = @transform_5, window_bounds = array<i64: 128, 128>}, {pipeline_mode = #tpu.pipeline_mode<synchronous>, transform_indices = @transform_6, window_bounds = array<i64: 1, 128>}, {pipeline_mode = #tpu.pipeline_mode<synchronous>, transform_indices = @transform_7, window_bounds = array<i64: 1, 128>}, {pipeline_mode = #tpu.pipeline_mode<synchronous>, transform_indices = @transform_8, window_bounds = array<i64: 1, 1>}, {transform_indices = @transform_9, window_bounds = array<i64: 8, 1>}]} {
    %c0 = arith.constant 0 : index
    %c0_0 = arith.constant 0 : index
    %0 = vector.load %arg1[%c0, %c0_0] : memref<8x16xf32, #tpu.memory_space<vmem>>, vector<8x16xf32>
    %c0_1 = arith.constant 0 : index
    %c0_2 = arith.constant 0 : index
    %1 = vector.load %arg2[%c0_1, %c0_2] : memref<8x8xf32, #tpu.memory_space<vmem>>, vector<8x8xf32>
    %c0_3 = arith.constant 0 : index
    %c0_4 = arith.constant 0 : index
    %2 = vector.load %arg3[%c0_3, %c0_4] : memref<16x128xf32, #tpu.memory_space<vmem>>, vector<16x128xf32>
    %cst = arith.constant dense<0.000000e+00> : vector<8x128xf32>
    %3 = tpu.matmul %0, %2, %cst {dimension_numbers = #tpu.dot_dimension_numbers<[1], [0], [0], [1], [0, 0, 1, 1], [], []>} : vector<8x16xf32>, vector<16x128xf32>, vector<8x128xf32> -> vector<8x128xf32>
    %c0_5 = arith.constant 0 : index
    %c0_6 = arith.constant 0 : index
    %4 = vector.load %arg4[%c0_5, %c0_6] : memref<8x128xf32, #tpu.memory_space<vmem>>, vector<8x128xf32>
    %cst_7 = arith.constant dense<0.000000e+00> : vector<8x128xf32>
    %5 = tpu.matmul %1, %4, %cst_7 {dimension_numbers = #tpu.dot_dimension_numbers<[1], [0], [0], [1], [0, 0, 1, 1], [], []>} : vector<8x8xf32>, vector<8x128xf32>, vector<8x128xf32> -> vector<8x128xf32>
    %6 = arith.addf %3, %5 : vector<8x128xf32>
    %c0_8 = arith.constant 0 : index
    %c0_9 = arith.constant 0 : index
    %7 = vector.load %arg5[%c0_8, %c0_9] : memref<1x128xf32, #tpu.memory_space<vmem>>, vector<1x128xf32>
    %8 = vector.broadcast %7 : vector<1x128xf32> to vector<8x128xf32>
    %9 = arith.addf %6, %8 : vector<8x128xf32>
    %cst_10 = arith.constant 0.000000e+00 : f32
    %10 = vector.broadcast %cst_10 : f32 to vector<8x128xf32>
    %11 = arith.maximumf %9, %10 : vector<8x128xf32>
    %c0_11 = arith.constant 0 : index
    %c0_12 = arith.constant 0 : index
    %12 = vector.load %arg6[%c0_11, %c0_12] : memref<128x128xf32, #tpu.memory_space<vmem>>, vector<128x128xf32>
    %cst_13 = arith.constant dense<0.000000e+00> : vector<8x128xf32>
    %13 = tpu.matmul %11, %12, %cst_13 {dimension_numbers = #tpu.dot_dimension_numbers<[1], [0], [0], [1], [0, 0, 1, 1], [], []>} : vector<8x128xf32>, vector<128x128xf32>, vector<8x128xf32> -> vector<8x128xf32>
    %c0_14 = arith.constant 0 : index
    %c0_15 = arith.constant 0 : index
    %14 = vector.load %arg7[%c0_14, %c0_15] : memref<1x128xf32, #tpu.memory_space<vmem>>, vector<1x128xf32>
    %15 = vector.broadcast %14 : vector<1x128xf32> to vector<8x128xf32>
    %16 = arith.addf %13, %15 : vector<8x128xf32>
    %cst_16 = arith.constant 0.000000e+00 : f32
    %17 = vector.broadcast %cst_16 : f32 to vector<8x128xf32>
    %18 = arith.maximumf %16, %17 : vector<8x128xf32>
    %c0_17 = arith.constant 0 : index
    %c0_18 = arith.constant 0 : index
    %19 = vector.load %arg8[%c0_17, %c0_18] : memref<1x128xf32, #tpu.memory_space<vmem>>, vector<1x128xf32>
    %20 = vector.broadcast %19 : vector<1x128xf32> to vector<8x128xf32>
    %21 = arith.mulf %18, %20 : vector<8x128xf32>
    %cst_19 = arith.constant dense<0.000000e+00> : vector<8xf32>
    %22 = vector.multi_reduction <add>, %21, %cst_19 [1] : vector<8x128xf32> to vector<8xf32>
    %23 = vector.shape_cast %22 : vector<8xf32> to vector<8x1xf32>
    %c0_20 = arith.constant 0 : index
    %c0_21 = arith.constant 0 : index
    %24 = vector.load %arg9[%c0_20, %c0_21] : memref<1x1xf32, #tpu.memory_space<vmem>>, vector<1x1xf32>
    %25 = vector.broadcast %24 : vector<1x1xf32> to vector<8x1xf32>
    %26 = arith.addf %23, %25 : vector<8x1xf32>
    %c0_22 = arith.constant 0 : index
    %c0_23 = arith.constant 0 : index
    %27 = vector.load %arg10[%c0_22, %c0_23] : memref<8x1xf32, #tpu.memory_space<vmem>>, vector<8x1xf32>
    tpu.vector_store %arg10[%c0_22, %c0_23], %26 {strides = array<i32>} : memref<8x1xf32, #tpu.memory_space<vmem>>, vector<8x1xf32>,
    return
  }
  func.func @transform_0(%arg0: i32) -> (i32, i32) {
    %c0_i32 = arith.constant 0 : i32
    %c0_i32_0 = arith.constant 0 : i32
    return %arg0, %c0_i32 : i32, i32
  }
  func.func @transform_1(%arg0: i32) -> (i32, i32) {
    %c0_i32 = arith.constant 0 : i32
    %c0_i32_0 = arith.constant 0 : i32
    return %arg0, %c0_i32 : i32, i32
  }
  func.func @transform_2(%arg0: i32) -> (i32, i32) {
    %c0_i32 = arith.constant 0 : i32
    %c0_i32_0 = arith.constant 0 : i32
    %c0_i32_1 = arith.constant 0 : i32
    return %c0_i32, %c0_i32_0 : i32, i32
  }
  func.func @transform_3(%arg0: i32) -> (i32, i32) {
    %c0_i32 = arith.constant 0 : i32
    %c0_i32_0 = arith.constant 0 : i32
    %c0_i32_1 = arith.constant 0 : i32
    return %c0_i32, %c0_i32_0 : i32, i32
  }
  func.func @transform_4(%arg0: i32) -> (i32, i32) {
    %c0_i32 = arith.constant 0 : i32
    %c0_i32_0 = arith.constant 0 : i32
    %c0_i32_1 = arith.constant 0 : i32
    return %c0_i32, %c0_i32_0 : i32, i32
  }
  func.func @transform_5(%arg0: i32) -> (i32, i32) {
    %c0_i32 = arith.constant 0 : i32
    %c0_i32_0 = arith.constant 0 : i32
    %c0_i32_1 = arith.constant 0 : i32
    return %c0_i32, %c0_i32_0 : i32, i32
  }
  func.func @transform_6(%arg0: i32) -> (i32, i32) {
    %c0_i32 = arith.constant 0 : i32
    %c0_i32_0 = arith.constant 0 : i32
    %c0_i32_1 = arith.constant 0 : i32
    return %c0_i32, %c0_i32_0 : i32, i32
  }
  func.func @transform_7(%arg0: i32) -> (i32, i32) {
    %c0_i32 = arith.constant 0 : i32
    %c0_i32_0 = arith.constant 0 : i32
    %c0_i32_1 = arith.constant 0 : i32
    return %c0_i32, %c0_i32_0 : i32, i32
  }
  func.func @transform_8(%arg0: i32) -> (i32, i32) {
    %c0_i32 = arith.constant 0 : i32
    %c0_i32_0 = arith.constant 0 : i32
    %c0_i32_1 = arith.constant 0 : i32
    return %c0_i32, %c0_i32_0 : i32, i32
  }
  func.func @transform_9(%arg0: i32) -> (i32, i32) {
    %c0_i32 = arith.constant 0 : i32
    %c0_i32_0 = arith.constant 0 : i32
    return %arg0, %c0_i32 : i32, i32
  }
}

</mosaic_0001>

<bundles_post_ra>
// kernel: tpu_custom_call.1
= control target key start
LH: loop header
LB: loop body
LE: loop exit
PB: predicated region body
PF: predicated region fallthrough
CT: control target
= control target key end

     0   :  { %s680_s0 = inlined_call_operand.hbm [shape: f32[8,16], index: 0, kind: input, shape index: {}]   ;;  %s681_s1 = inlined_call_operand.hbm [shape: f32[8,8], index: 1, kind: input, shape index: {}]   ;;  %s682_s2 = inlined_call_operand.hbm [shape: f32[16,128], index: 2, kind: input, shape index: {}]   ;;  %s683_s3 = inlined_call_operand.hbm [shape: f32[8,128], index: 3, kind: input, shape index: {}]   ;;  %s684_s4 = inlined_call_operand.vmem [shape: f32[1,128], index: 4, kind: input, shape index: {}]   ;;  %s685_s5 = inlined_call_operand.hbm [shape: f32[128,128], index: 5, kind: input, shape index: {}]   ;;  %s686_s6 = inlined_call_operand.vmem [shape: f32[1,128], index: 6, kind: input, shape index: {}]   ;;  %s687_s7 = inlined_call_operand.vmem [shape: f32[1,128], index: 7, kind: input, shape index: {}]   ;;  %s688_s8 = inlined_call_operand.<no memory space> [shape: f32[1,1], index: 8, kind: input, shape index: {}]   ;;  %s689_s9 = inlined_call_operand.vmem [shape: f32[8,1], index: 9, kind: output, shape index: {}]  }
   0x1   :  { %v14_v0 = vstv %s688_s8 }
   0x2   :  { %15 = vst [vmem:[#allocation2] sm:$0x1] %v14_v0 }
   0x3   :  { %16 = vsyncpa [#allocation4], 0 }
   0x4   :  { %17 = vsyncpa [#allocation6], 0 }
   0x5   :  { %18 = vsyncpa [#allocation9], 0  ;;  %s569_s11 = smov [#allocation5]   ;;  %s570_s13 = smov [#allocation8]  }
   0x6   :  { %s35_s12 = sshll.u32 %s569_s11, 4  ;;  %s57_s14 = sshll.u32 %s570_s13, 4  ;;  %s36_s12 = int_to_ptr.vmem [resolvable:$true] %s35_s12  ;;  %s58_s14 = int_to_ptr.vmem [resolvable:$true] %s57_s14 }
   0x7   :  { %s471_s15 = scalar_lea.vmem %s36_s12, 128  ;;  %p476_p1 = scmp.lt.s32.totalorder %s36_s12, %s36_s12 }
   0x8   :  { %p472_p0 = scmp.ne.s32.totalorder %s36_s12, %s471_s15  ;;  %p477_p2 = scmp.lt.s32.totalorder %s471_s15, %s471_s15 }
   0xa   :  { %p478_p3 = por %p477_p2, %p476_p1 }
   0xc   :  { %p479_p4 = pnand %p478_p3, %p472_p0 }
   0xe   :  { %482 = shalt.err (!%p479_p4)
}
   0xf   :  { %38 = dma.hbm_to_vmem [thread:$0]  %s681_s1, 128, %s36_s12, [#allocation6]  }
  0x10   :  { %s491_s8 = scalar_lea.vmem %s58_s14, 128  ;;  %p496_p6 = scmp.lt.s32.totalorder %s58_s14, %s58_s14 }
  0x11   :  { %p492_p5 = scmp.ne.s32.totalorder %s58_s14, %s491_s8  ;;  %p497_p7 = scmp.lt.s32.totalorder %s491_s8, %s491_s8 }
  0x13   :  { %p498_p8 = por %p497_p7, %p496_p6 }
  0x15   :  { %p499_p9 = pnand %p498_p8, %p492_p5 }
  0x17   :  { %502 = shalt.err (!%p499_p9)
}
  0x18   :  { %60 = dma.hbm_to_vmem [thread:$0]  %s683_s3, 128, %s58_s14, [#allocation9]  }
  0x19   :  { %s571_s20 = smov [#allocation3]   ;;  %s572_s22 = smov [#allocation7]  }
  0x1a   :  { %s25_s21 = sshll.u32 %s571_s20, 4  ;;  %s44_s23 = sshll.u32 %s572_s22, 4  ;;  %s26_s21 = int_to_ptr.vmem [resolvable:$true] %s25_s21  ;;  %s45_s23 = int_to_ptr.vmem [resolvable:$true] %s44_s23 }
  0x1b   :  { %s511_s24 = scalar_lea.vmem %s26_s21, 128  ;;  %p516_p11 = scmp.lt.s32.totalorder %s26_s21, %s26_s21 }
  0x1c   :  { %p512_p10 = scmp.ne.s32.totalorder %s26_s21, %s511_s24  ;;  %p517_p12 = scmp.lt.s32.totalorder %s511_s24, %s511_s24 }
  0x1e   :  { %p518_p13 = por %p517_p12, %p516_p11 }
  0x20   :  { %p519_p0 = pnand %p518_p13, %p512_p10 }
  0x22   :  { %522 = shalt.err (!%p519_p0)
}
  0x23   :  { %28 = dma.hbm_to_vmem [thread:$0]  %s680_s0, 128, %s26_s21, [#allocation4]  }
  0x24   :  { %s531_s26 = scalar_lea.vmem %s45_s23, 256  ;;  %p536_p2 = scmp.lt.s32.totalorder %s45_s23, %s45_s23 }
  0x25   :  { %p532_p1 = scmp.ne.s32.totalorder %s45_s23, %s531_s26  ;;  %p537_p3 = scmp.lt.s32.totalorder %s531_s26, %s531_s26 }
  0x27   :  { %p538_p4 = por %p537_p3, %p536_p2 }
  0x29   :  { %p539_p5 = pnand %p538_p4, %p532_p1 }
  0x2b   :  { %542 = shalt.err (!%p539_p5)
}
  0x2c   :  { %s573_s3 = smov 128   ;;  %s574_s27 = smov 8  }
  0x2d   :  { %50 = dma.hbm_to_vmem [thread:$0]  %s682_s2, 256, %s45_s23, [#allocation6], %s573_s3, %s573_s3, %s574_s27  }
  0x2e   :  { %s575_s30 = smov [#allocation10]  }
  0x2f   :  { %s68_s10 = sshll.u32 %s575_s30, 4  ;;  %s69_s10 = int_to_ptr.vmem [resolvable:$true] %s68_s10 }
  0x30   :  { %s551_s11 = scalar_lea.vmem %s69_s10, 2048  ;;  %p556_p7 = scmp.lt.s32.totalorder %s69_s10, %s69_s10 }
  0x31   :  { %p552_p6 = scmp.ne.s32.totalorder %s69_s10, %s551_s11  ;;  %p557_p8 = scmp.lt.s32.totalorder %s551_s11, %s551_s11 }
  0x33   :  { %p558_p9 = por %p557_p8, %p556_p7 }
  0x35   :  { %p559_p10 = pnand %p558_p9, %p552_p6 }
  0x37   :  { %562 = shalt.err (!%p559_p10)
}
  0x38   :  { %74 = dma.hbm_to_vmem [thread:$0]  %s685_s5, 2048, %s69_s10, [#allocation9], %s573_s3, %s573_s3, %s574_s27  }
  0x39   :  { %563 = dma.done.wait [#allocation4], 128  }
  0x3a   :  { %564 = vsyncadd [#allocation4], 4294967168 }
  0x3b   :  { %565 = dma.done.wait [#allocation6], 384  }
  0x3c   :  { %566 = vsyncadd [#allocation6], 4294966912 }
  0x3d   :  { %567 = dma.done.wait [#allocation9], 2176  }
  0x3e   :  { %568 = vsyncadd [#allocation9], 4294965120  ;;  %v576_v1 = vmov 0.0   ;;  %vm577_vm0 = vmmov 0   ;;  %vm101_vm1 = vcmask 64512   ;;  %v100_v2 = vld [vmem:[#allocation8] sm:$0xff] }
  0x3f   :  { %407 = vmatprep.subr.mxu1 %v576_v1  ;;  %409 = vmatprep.mubr.msk.f32.mxu1 %vm577_vm0, %v576_v1  ;;  %v97_v3 = vld [vmem:[#allocation5] sm:$0xff]  ;;  %v99_v4 = vld [vmem:[#allocation7 + $0x8] sm:$0xff]  ;;  %v273_v5 = vld [vmem:[#allocation10 + $0x78] sm:$0xff]  ;;  %vm175_vm2 = vcmask 130048   ;;  %vm370_vm3 = vcmask 7168  }
  0x40   :  { %419 = vmatprep.subr.mxu0 %v576_v1  ;;  %451 = vmatprep.mubr.msk.f32.mxu0 %vm577_vm0, %v576_v1  ;;  %v98_v6 = vld [vmem:[#allocation7] sm:$0xff]  ;;  %v96_v7 = vld [vmem:[#allocation3] sm:$0xff]  ;;  %v272_v8 = vld [vmem:[#allocation10 + $0x70] sm:$0xff] }
  0x41   :  { %408 = vmatpush3.msra.mxu1 %v100_v2  ;;  %420 = vmatpush3.msra.mxu0 %v273_v5  ;;  %v271_v9 = vld [vmem:[#allocation10 + $0x68] sm:$0xff]  ;;  %v270_v10 = vld [vmem:[#allocation10 + $0x60] sm:$0xff]  ;;  %v269_v11 = vld [vmem:[#allocation10 + $0x58] sm:$0xff] }
  0x42   :  { %410 = vmatmul.mubr.msk.f32.vlgmr.msra.gmra.mxu1 %vm101_vm1, %v97_v3  ;;  %412 = vmatprep.subr.mxu1 %v576_v1  ;;  %v268_v12 = vld [vmem:[#allocation10 + $0x50] sm:$0xff]  ;;  %v267_v13 = vld [vmem:[#allocation10 + $0x48] sm:$0xff]  ;;  %v266_v14 = vld [vmem:[#allocation10 + $0x40] sm:$0xff] }
  0x43   :  { %413 = vmatpush3.msra.mxu1 %v99_v4  ;;  %416 = vmatprep.mubr.msk.f32.mxu1 %vm577_vm0, %v576_v1  ;;  %v265_v15 = vld [vmem:[#allocation10 + $0x38] sm:$0xff]  ;;  %v264_v16 = vld [vmem:[#allocation10 + $0x30] sm:$0xff]  ;;  %v263_v17 = vld [vmem:[#allocation10 + $0x28] sm:$0xff] }
  0x44   :  { %414 = vmatprep.subr.mxu1 %v576_v1  ;;  %421 = vmatprep.subr.mxu0 %v576_v1  ;;  %v262_v18 = vld [vmem:[#allocation10 + $0x20] sm:$0xff]  ;;  %v261_v19 = vld [vmem:[#allocation10 + $0x18] sm:$0xff]  ;;  %v260_v20 = vld [vmem:[#allocation10 + $0x10] sm:$0xff] }
  0x45   :  { %415 = vmatpush3.msra.mxu1 %v98_v6  ;;  %422 = vmatpush3.msra.mxu0 %v272_v8  ;;  %v259_v21 = vld [vmem:[#allocation10 + $0x8] sm:$0xff]  ;;  %v258_v22 = vld [vmem:[#allocation10] sm:$0xff]  ;;  %v381_v26 = vld [vmem:[%s684_s4] ss:$0 sm:$0xff] }
  0x46   :  { %417 = vmatmul.mubr.msk.f32.vlgmr.msra.gmra.mxu1 %vm175_vm2, %v96_v7  ;;  %423 = vmatprep.subr.mxu0 %v576_v1  ;;  %v382_v31 = vld [vmem:[%s686_s6] ss:$0 sm:$0xff] }
  0x47   :  { %424 = vmatpush3.msra.mxu0 %v271_v9  ;;  %v383_v35 = vld [vmem:[%s687_s7] ss:$0 sm:$0xff] }
  0x48   :  { %425 = vmatprep.subr.mxu0 %v576_v1  ;;  %v384_v38 = vld [vmem:[#allocation2] ss:$0 sm:$0xff] }
  0x49   :  { %426 = vmatpush3.msra.mxu0 %v270_v10 }
  0x4a   :  { %427 = vmatprep.subr.mxu0 %v576_v1 }
  0x4b   :  { %428 = vmatpush3.msra.mxu0 %v269_v11 }
  0x4c   :  { %429 = vmatprep.subr.mxu0 %v576_v1 }
  0x4d   :  { %430 = vmatpush3.msra.mxu0 %v268_v12 }
  0x4e   :  { %431 = vmatprep.subr.mxu0 %v576_v1 }
  0x4f   :  { %432 = vmatpush3.msra.mxu0 %v267_v13 }
  0x50   :  { %433 = vmatprep.subr.mxu0 %v576_v1 }
  0x51   :  { %434 = vmatpush3.msra.mxu0 %v266_v14 }
  0x52   :  { %435 = vmatprep.subr.mxu0 %v576_v1 }
  0x53   :  { %436 = vmatpush3.msra.mxu0 %v265_v15 }
  0x54   :  { %437 = vmatprep.subr.mxu0 %v576_v1 }
  0x55   :  { %438 = vmatpush3.msra.mxu0 %v264_v16 }
  0x56   :  { %439 = vmatprep.subr.mxu0 %v576_v1 }
  0x57   :  { %440 = vmatpush3.msra.mxu0 %v263_v17 }
  0x58   :  { %441 = vmatprep.subr.mxu0 %v576_v1 }
  0x59   :  { %442 = vmatpush3.msra.mxu0 %v262_v18 }
  0x5a   :  { %443 = vmatprep.subr.mxu0 %v576_v1 }
  0x5b   :  { %444 = vmatpush3.msra.mxu0 %v261_v19 }
  0x5c   :  { %445 = vmatprep.subr.mxu0 %v576_v1 }
  0x5d   :  { %446 = vmatpush3.msra.mxu0 %v260_v20 }
  0x5e   :  { %447 = vmatprep.subr.mxu0 %v576_v1 }
  0x5f   :  { %448 = vmatpush3.msra.mxu0 %v259_v21 }
  0x60   :  { %449 = vmatprep.subr.mxu0 %v576_v1 }
  0x61   :  { %450 = vmatpush3.msra.mxu0 %v258_v22 }
 0x102   :  { %v171_v23 = vpop.f32.mrf.mxu1 }
 0x104   :  { %v411_v24 = vpop.f32.mrf.mxu1 }
 0x106   :  { %v245_v25 = vpop.f32.mrf.mxu1 }
 0x107   :  { %v246_v27 = vadd.f32 %v245_v25, %v171_v23 }
 0x108   :  { %v418_v28 = vpop.f32.mrf.mxu1 }
 0x109   :  { %v256_v29 = vadd.f32 %v381_v26, %v246_v27 }
 0x10b   :  { %v257_v30 = vmax.f32 %v256_v29, 0.0 }
 0x10d   :  { %452 = vmatmul.mubr.f32.vlgmr.msra.gmra.mxu0 %v257_v30 }
 0x1cd   :  { %v347_v32 = vpop.f32.mrf.mxu0 }
 0x1ce   :  { %v348_v33 = vadd.f32 %v382_v31, %v347_v32 }
 0x1cf   :  { %v453_v34 = vpop.f32.mrf.mxu0 }
 0x1d0   :  { %v351_v36 = vmax.f32 %v348_v33, 0.0 }
 0x1d2   :  { %v359_v37 = vmul.f32 %v383_v35, %v351_v36 }
 0x1d4   :  { %360 = vadd.xlane.f32.xlu0 %v359_v37 }
 0x25d   :  { %v361_v39 = vpop.xlane.xlu0 %360 }
 0x25e   :  { %v369_v40 = vadd.f32 %v384_v38, %v361_v39 }
 0x260   :  { %371 = vst.msk [vmem:[%s689_s9] sm:$0xff] %vm370_vm3, %v369_v40 }
 0x261   :  { %376 = vsyncpa [#allocation4], 1 }
 0x262   :  { %377 = vsyncpa [#allocation6], 1 }
 0x263   :  { %378 = vsyncpa [#allocation9], 1 }

</bundles_post_ra>
